<compile_context>
chip_gen: v5e
topology: v5e:2x2
jax: 0.10.0
libtpu: 0.0.40
codegen_flags: <defaults>
</compile_context>

<pallas_src>
import jax
import jax.numpy as jnp
from jax.experimental import pallas as pl
from jax.experimental.pallas import tpu as pltpu


# ----------------------------- Pallas kernel ------------------------------ #

def _make_fused_align_kernel(n_mod):
    """Kernel with refs: w_0, x_0, ..., w_{n-1}, x_{n-1}, o_0, ..., o_{n-1}."""

    def kernel(*refs):
        w_refs = refs[0:2 * n_mod:2]
        x_refs = refs[1:2 * n_mod:2]
        o_refs = refs[2 * n_mod:]
        for w_ref, x_ref, o_ref in zip(w_refs, x_refs, o_refs):
            # (L_out, L_in) @ (L_in, B*D) on the MXU, f32 accumulation.
            o_ref[...] = jnp.dot(
                w_ref[...], x_ref[...], preferred_element_type=jnp.float32
            ).astype(o_ref.dtype)

    return kernel


def fused_align_conv1d(pairs):
    """Fused Conv1d(k=1, bias=False) alignment for several modalities.

    pairs: list of (x, w) with x: (B, L_in, D), w: (L_out, L_in).
    Returns list of aligned tensors (B, L_out, D), one per pair, computed in a
    single pallas_call / single grid step.
    """
    n = len(pairs)
    flat_inputs = []
    in_specs = []
    out_shapes = []
    out_specs = []
    metas = []

    for x, w in pairs:
        B, L_in, D = x.shape
        L_out = w.shape[0]
        # Lane-dense RHS slab: (L_in, B*D). Wrapper-side layout plumbing only.
        x2 = jnp.transpose(x, (1, 0, 2)).reshape(L_in, B * D)
        flat_inputs += [w, x2]
        in_specs += [
            pl.BlockSpec((L_out, L_in), lambda i: (0, 0)),   # weight, resident
            pl.BlockSpec((L_in, B * D), lambda i: (0, 0)),   # whole RHS slab
        ]
        out_shapes.append(jax.ShapeDtypeStruct((L_out, B * D), x.dtype))
        out_specs.append(pl.BlockSpec((L_out, B * D), lambda i: (0, 0)))
        metas.append((B, L_out, D))

    outs = pl.pallas_call(
        _make_fused_align_kernel(n),
        out_shape=tuple(out_shapes),
        grid=(1,),  # single step: whole problem fits easily in VMEM
        in_specs=in_specs,
        out_specs=tuple(out_specs),
        compiler_params=pltpu.CompilerParams(
            dimension_semantics=("arbitrary",)
        ),
    )(*flat_inputs)

    results = []
    for y, (B, L_out, D) in zip(outs, metas):
        results.append(jnp.transpose(y.reshape(L_out, B, D), (1, 0, 2)))
    return results


# ------------------------------ AlignNet ---------------------------------- #

class AlignNet:
    def __init__(self, feature_dim, seq_lens, aligned_mode="convnet", key=None):
        self.feature_dim = feature_dim
        self.seq_lens = seq_lens
        self.aligned_length = seq_lens[0]
        self.aligned_mode = aligned_mode

        if aligned_mode == "convnet":
            key = jax.random.PRNGKey(0) if key is None else key
            ks = jax.random.split(key, 3)

            # nn.Conv1d(in=seq_len, out=aligned_length, k=1, bias=False):
            # weight (out, in, 1) -> squeezed to (out, in).
            # Kaiming-uniform-like init (bound = 1/sqrt(fan_in)).
            def _init(k, out_c, in_c):
                bound = 1.0 / (in_c ** 0.5)
                return jax.random.uniform(
                    k, (out_c, in_c), jnp.float32, minval=-bound, maxval=bound
                )

            self.W_t = _init(ks[0], self.aligned_length, seq_lens[0])
            self.W_a = _init(ks[1], self.aligned_length, seq_lens[1])
            self.W_v = _init(ks[2], self.aligned_length, seq_lens[2])
        elif aligned_mode == "ctc":
            # TODO(synk): CTCModule is not defined in the reference source;
            # 'ctc' aligned_mode cannot be reproduced.
            raise NotImplementedError("ctc mode requires CTCModule (undefined)")

    # Plain-JAX glue, faithful to AlignNet.__avg_pool (pad with last step,
    # then mean over pooling groups).
    def _avg_pool_align(self, minf):
        B, mlength, D = minf.shape
        L = self.aligned_length
        if mlength == L:
            return minf
        if mlength % L == 0:
            pad_len = 0
            pool_size = mlength // L
        else:
            pad_len = L - mlength % L
            pool_size = mlength // L + 1
        pad = jnp.broadcast_to(minf[:, -1:, :], (B, pad_len, D))
        m = jnp.concatenate([minf, pad], axis=1).reshape(B, pool_size, L, D)
        return m.mean(axis=1)

    def __call__(self, text, audio, vision):
        # forward(): identity if all modalities already share the seq length.
        if text.shape[1] == audio.shape[1] == vision.shape[1]:
            return text, audio, vision

        if self.aligned_mode == "convnet":
            mods = [("t", text, self.W_t),
                    ("a", audio, self.W_a),
                    ("v", vision, self.W_v)]
            pairs = []
            which = {}
            for name, x, w in mods:
                if x.shape[1] != self.aligned_length:
                    which[name] = len(pairs)
                    pairs.append((x, w))
            aligned = fused_align_conv1d(pairs) if pairs else []
            out = {name: (aligned[which[name]] if name in which else x)
                   for name, x, _ in mods}
            return out["t"], out["a"], out["v"]

        if self.aligned_mode == "avg_pool":
            return (self._avg_pool_align(text),
                    self._avg_pool_align(audio),
                    self._avg_pool_align(vision))

        raise ValueError(f"unknown aligned_mode {self.aligned_mode}")


# -------------------------------- main ------------------------------------ #

if __name__ == "__main__":
    # args.feature_dim = (32, 16, 64), args.seq_lens = (8, 16, 24)
    feature_dim = (32, 16, 64)
    seq_lens = (8, 16, 24)
    batch = 2

    net = AlignNet(feature_dim, seq_lens, aligned_mode="convnet",
                   key=jax.random.PRNGKey(1))

    key = jax.random.PRNGKey(0)
    kt, ka, kv = jax.random.split(key, 3)
    text = jax.random.normal(kt, (batch, seq_lens[0], feature_dim[0]), jnp.float32)
    audio = jax.random.normal(ka, (batch, seq_lens[1], feature_dim[1]), jnp.float32)
    vision = jax.random.normal(kv, (batch, seq_lens[2], feature_dim[2]), jnp.float32)

    t_out, a_out, v_out = net(text, audio, vision)
    jax.block_until_ready((t_out, a_out, v_out))

    # sanity check against a plain-JAX reference of the conv1d(k=1) semantics
    ref_a = jnp.einsum("oi,bif->bof", net.W_a, audio)
    ref_v = jnp.einsum("oi,bif->bof", net.W_v, vision)
    assert t_out.shape == (batch, seq_lens[0], feature_dim[0])
    assert a_out.shape == (batch, seq_lens[0], feature_dim[1])
    assert v_out.shape == (batch, seq_lens[0], feature_dim[2])
    assert jnp.allclose(t_out, text)                      # pass-through branch
    assert jnp.allclose(a_out, ref_a, atol=1e-5)
    assert jnp.allclose(v_out, ref_v, atol=1e-5)

    print("KERNEL_OK")
</pallas_src>

<mosaic_0001>
module attributes {stable_mosaic.version = 11 : i64} {
  func.func @kernel(%arg0: i32, %arg1: memref<8x16xf32, #tpu.memory_space<vmem>>, %arg2: memref<16x32xf32, #tpu.memory_space<vmem>>, %arg3: memref<8x24xf32, #tpu.memory_space<vmem>>, %arg4: memref<24x128xf32, #tpu.memory_space<vmem>>, %arg5: memref<8x32xf32, #tpu.memory_space<vmem>>, %arg6: memref<8x128xf32, #tpu.memory_space<vmem>>) attributes {dimension_semantics = [#tpu.dimension_semantics<arbitrary>], iteration_bounds = array<i64: 1>, scalar_prefetch = 0 : i64, scratch_operands = 0 : i64, tpu.core_type = #tpu.core_type<tc>, window_params = [{pipeline_mode = #tpu.pipeline_mode<synchronous>, transform_indices = @transform_0, window_bounds = array<i64: 8, 16>}, {pipeline_mode = #tpu.pipeline_mode<synchronous>, transform_indices = @transform_1, window_bounds = array<i64: 16, 32>}, {pipeline_mode = #tpu.pipeline_mode<synchronous>, transform_indices = @transform_2, window_bounds = array<i64: 8, 24>}, {pipeline_mode = #tpu.pipeline_mode<synchronous>, transform_indices = @transform_3, window_bounds = array<i64: 24, 128>}, {pipeline_mode = #tpu.pipeline_mode<synchronous>, transform_indices = @transform_4, window_bounds = array<i64: 8, 32>}, {pipeline_mode = #tpu.pipeline_mode<synchronous>, transform_indices = @transform_5, window_bounds = array<i64: 8, 128>}]} {
    %c0 = arith.constant 0 : index
    %c0_0 = arith.constant 0 : index
    %0 = vector.load %arg1[%c0, %c0_0] : memref<8x16xf32, #tpu.memory_space<vmem>>, vector<8x16xf32>
    %c0_1 = arith.constant 0 : index
    %c0_2 = arith.constant 0 : index
    %1 = vector.load %arg2[%c0_1, %c0_2] : memref<16x32xf32, #tpu.memory_space<vmem>>, vector<16x32xf32>
    %cst = arith.constant dense<0.000000e+00> : vector<8x32xf32>
    %2 = tpu.matmul %0, %1, %cst {dimension_numbers = #tpu.dot_dimension_numbers<[1], [0], [0], [1], [0, 0, 1, 1], [], []>} : vector<8x16xf32>, vector<16x32xf32>, vector<8x32xf32> -> vector<8x32xf32>
    %c0_3 = arith.constant 0 : index
    %c0_4 = arith.constant 0 : index
    %3 = vector.load %arg5[%c0_3, %c0_4] : memref<8x32xf32, #tpu.memory_space<vmem>>, vector<8x32xf32>
    tpu.vector_store %arg5[%c0_3, %c0_4], %2 {strides = array<i32>} : memref<8x32xf32, #tpu.memory_space<vmem>>, vector<8x32xf32>,
    %c0_5 = arith.constant 0 : index
    %c0_6 = arith.constant 0 : index
    %4 = vector.load %arg3[%c0_5, %c0_6] : memref<8x24xf32, #tpu.memory_space<vmem>>, vector<8x24xf32>
    %c0_7 = arith.constant 0 : index
    %c0_8 = arith.constant 0 : index
    %5 = vector.load %arg4[%c0_7, %c0_8] : memref<24x128xf32, #tpu.memory_space<vmem>>, vector<24x128xf32>
    %cst_9 = arith.constant dense<0.000000e+00> : vector<8x128xf32>
    %6 = tpu.matmul %4, %5, %cst_9 {dimension_numbers = #tpu.dot_dimension_numbers<[1], [0], [0], [1], [0, 0, 1, 1], [], []>} : vector<8x24xf32>, vector<24x128xf32>, vector<8x128xf32> -> vector<8x128xf32>
    %c0_10 = arith.constant 0 : index
    %c0_11 = arith.constant 0 : index
    %7 = vector.load %arg6[%c0_10, %c0_11] : memref<8x128xf32, #tpu.memory_space<vmem>>, vector<8x128xf32>
    tpu.vector_store %arg6[%c0_10, %c0_11], %6 {strides = array<i32>} : memref<8x128xf32, #tpu.memory_space<vmem>>, vector<8x128xf32>,
    return
  }
  func.func @transform_0(%arg0: i32) -> (i32, i32) {
    %c0_i32 = arith.constant 0 : i32
    %c0_i32_0 = arith.constant 0 : i32
    %c0_i32_1 = arith.constant 0 : i32
    return %c0_i32, %c0_i32_0 : i32, i32
  }
  func.func @transform_1(%arg0: i32) -> (i32, i32) {
    %c0_i32 = arith.constant 0 : i32
    %c0_i32_0 = arith.constant 0 : i32
    %c0_i32_1 = arith.constant 0 : i32
    return %c0_i32, %c0_i32_0 : i32, i32
  }
  func.func @transform_2(%arg0: i32) -> (i32, i32) {
    %c0_i32 = arith.constant 0 : i32
    %c0_i32_0 = arith.constant 0 : i32
    %c0_i32_1 = arith.constant 0 : i32
    return %c0_i32, %c0_i32_0 : i32, i32
  }
  func.func @transform_3(%arg0: i32) -> (i32, i32) {
    %c0_i32 = arith.constant 0 : i32
    %c0_i32_0 = arith.constant 0 : i32
    %c0_i32_1 = arith.constant 0 : i32
    return %c0_i32, %c0_i32_0 : i32, i32
  }
  func.func @transform_4(%arg0: i32) -> (i32, i32) {
    %c0_i32 = arith.constant 0 : i32
    %c0_i32_0 = arith.constant 0 : i32
    %c0_i32_1 = arith.constant 0 : i32
    return %c0_i32, %c0_i32_0 : i32, i32
  }
  func.func @transform_5(%arg0: i32) -> (i32, i32) {
    %c0_i32 = arith.constant 0 : i32
    %c0_i32_0 = arith.constant 0 : i32
    %c0_i32_1 = arith.constant 0 : i32
    return %c0_i32, %c0_i32_0 : i32, i32
  }
}

</mosaic_0001>

<bundles_post_ra>
// kernel: tpu_custom_call.1
= control target key start
LH: loop header
LB: loop body
LE: loop exit
PB: predicated region body
PF: predicated region fallthrough
CT: control target
= control target key end

     0   :  { %11 = vsyncpa [#allocation3], 0  ;;  %s393_s0 = inlined_call_operand.hbm [shape: f32[8,16], index: 0, kind: input, shape index: {}]   ;;  %s394_s1 = inlined_call_operand.hbm [shape: f32[16,32], index: 1, kind: input, shape index: {}]   ;;  %s395_s2 = inlined_call_operand.hbm [shape: f32[8,24], index: 2, kind: input, shape index: {}]   ;;  %s396_s3 = inlined_call_operand.hbm [shape: f32[24,128], index: 3, kind: input, shape index: {}]   ;;  %s397_s4 = inlined_call_operand.hbm [shape: f32[8,32], index: 4, kind: output, shape index: {0}]   ;;  %s398_s5 = inlined_call_operand.hbm [shape: f32[8,128], index: 5, kind: output, shape index: {1}]  }
   0x1   :  { %12 = vsyncpa [#allocation6], 0 }
   0x2   :  { %13 = vsyncpa [#allocation9], 0 }
   0x3   :  { %14 = vsyncpa [#allocation4], 0  ;;  %s31_s20 = sshll.u32 %s394_s1, 4  ;;  %s32_s20 = int_to_ptr.hbm [resolvable:$true] %s31_s20 }
   0x4   :  { %15 = vsyncpa [#allocation12], 0  ;;  %s337_s21 = smov [#allocation5]   ;;  %s21_s25 = sshll.u32 %s393_s0, 4  ;;  %s22_s25 = int_to_ptr.hbm [resolvable:$true] %s21_s25 }
   0x5   :  { %s33_s22 = sshll.u32 %s337_s21, 4  ;;  %s338_s26 = smov 128   ;;  %s34_s22 = int_to_ptr.vmem [resolvable:$true] %s33_s22 }
   0x6   :  { %s339_s27 = smov 8   ;;  %s340_s28 = smov [#allocation2]  }
   0x7   :  { %39 = dma.hbm_to_vmem [thread:$0]  %s32_s20, 256, %s34_s22, [#allocation6], %s338_s26, %s338_s26, %s339_s27  }
   0x8   :  { %s23_s29 = sshll.u32 %s340_s28, 4  ;;  %s45_s7 = sshll.u32 %s395_s2, 4  ;;  %s24_s29 = int_to_ptr.vmem [resolvable:$true] %s23_s29  ;;  %s46_s7 = int_to_ptr.hbm [resolvable:$true] %s45_s7 }
   0x9   :  { %26 = dma.hbm_to_vmem [thread:$0]  %s22_s25, 128, %s24_s29, [#allocation3]  }
   0xa   :  { %s55_s9 = sshll.u32 %s396_s3, 4  ;;  %s341_s10 = smov [#allocation7]   ;;  %s56_s9 = int_to_ptr.hbm [resolvable:$true] %s55_s9 }
   0xb   :  { %s47_s11 = sshll.u32 %s341_s10, 4  ;;  %s342_s0 = smov [#allocation8]   ;;  %s48_s11 = int_to_ptr.vmem [resolvable:$true] %s47_s11 }
   0xc   :  { %50 = dma.hbm_to_vmem [thread:$0]  %s46_s7, 128, %s48_s11, [#allocation6]  }
   0xd   :  { %s57_s12 = sshll.u32 %s342_s0, 4  ;;  %s58_s12 = int_to_ptr.vmem [resolvable:$true] %s57_s12 }
   0xe   :  { %63 = dma.hbm_to_vmem [thread:$0]  %s56_s9, 384, %s58_s12, [#allocation9], %s338_s26, %s338_s26, %s339_s27  }
   0xf   :  { %327 = dma.done.wait [#allocation3], 128  }
  0x10   :  { %328 = vsyncadd [#allocation3], 4294967168 }
  0x11   :  { %329 = dma.done.wait [#allocation6], 384  }
  0x12   :  { %330 = vsyncadd [#allocation6], 4294966912 }
  0x13   :  { %331 = dma.done.wait [#allocation9], 384  }
  0x14   :  { %332 = vsyncadd [#allocation9], 4294966912  ;;  %v112_v0 = vld [vmem:[#allocation8 + $0x10] sm:$0xff]  ;;  %v111_v2 = vld [vmem:[#allocation8 + $0x8] sm:$0xff]  ;;  %vm83_vm0 = vcmask 130048   ;;  %vm113_vm1 = vcmask 195584  }
  0x15   :  { %v82_v1 = vld [vmem:[#allocation5 + $0x8] sm:$0xff]  ;;  %130 = vmatpush.msra.mxu1 %v112_v0  ;;  %v81_v3 = vld [vmem:[#allocation5] sm:$0xff]  ;;  %v80_v4 = vld [vmem:[#allocation2] sm:$0xff]  ;;  %s343_s2 = smov [#allocation10]   ;;  %s145_s15 = sshll.u32 %s397_s4, 4  ;;  %vm107_vm2 = vcmask 261120   ;;  %s146_s15 = int_to_ptr.hbm [resolvable:$true] %s145_s15 }
  0x16   :  { %101 = vmatpush.msra.mxu0 %v82_v1  ;;  %v110_v5 = vld [vmem:[#allocation8] sm:$0xff]  ;;  %v109_v6 = vld [vmem:[#allocation7] sm:$0xff]  ;;  %s143_s3 = sshll.u32 %s343_s2, 4  ;;  %s344_s16 = smov [#allocation11]   ;;  %s144_s3 = int_to_ptr.vmem [resolvable:$true] %s143_s3 }
  0x17   :  { %131 = vmatpush.msra.mxu1 %v111_v2  ;;  %s154_s17 = sshll.u32 %s344_s16, 4  ;;  %s156_s20 = sshll.u32 %s398_s5, 4  ;;  %s155_s17 = int_to_ptr.vmem [resolvable:$true] %s154_s17  ;;  %s157_s20 = int_to_ptr.hbm [resolvable:$true] %s156_s20 }
  0x18   :  { %102 = vmatpush.msra.mxu0 %v81_v3 }
  0x19   :  { %173 = vmatmul.msk.f32.vlgmr.msra.gmra.mxu0 %vm83_vm0, %v80_v4  ;;  %132 = vmatpush.msra.mxu1 %v110_v5 }
  0x1a   :  { %174 = vmatmul.msk.f32.vlgmr.msra.gmra.mxu1 %vm113_vm1, %v109_v6 }
  0x96   :  { %v104_v7 = vpop.f32.mrf.mxu0 }
  0x97   :  { %108 = vst.msk [vmem:[#allocation10] sm:$0xff] %vm107_vm2, %v104_v7  ;;  %v134_v8 = vpop.f32.mrf.mxu1 }
  0x98   :  { %148 = dma.vmem_to_hbm [thread:$0]  %s144_s3, 128, %s146_s15, [#allocation4]   ;;  %137 = vst [vmem:[#allocation11] sm:$0xff] %v134_v8 }
  0x99   :  { %159 = dma.vmem_to_hbm [thread:$0]  %s155_s17, 128, %s157_s20, [#allocation12]  }
  0x9a   :  { %333 = dma.done.wait [#allocation4], 128  }
  0x9b   :  { %334 = vsyncadd [#allocation4], 4294967168 }
  0x9c   :  { %335 = dma.done.wait [#allocation12], 128  }
  0x9d   :  { %336 = vsyncadd [#allocation12], 4294967168 }
  0x9e   :  { %168 = vsyncpa [#allocation3], 1 }
  0x9f   :  { %169 = vsyncpa [#allocation6], 1 }
  0xa0   :  { %170 = vsyncpa [#allocation9], 1 }
  0xa1   :  { %171 = vsyncpa [#allocation4], 1 }
  0xa2   :  { %172 = vsyncpa [#allocation12], 1 }

</bundles_post_ra>
